<compile_context>
chip_gen: v5e
topology: v5e:2x2
jax: 0.10.0
libtpu: 0.0.40
codegen_flags: <defaults>
</compile_context>

<pallas_src>
import jax
import jax.numpy as jnp
import numpy as np
from jax.experimental import pallas as pl
from jax.experimental.pallas import tpu as pltpu


# ----------------------------------- kernel -------------------------------------------

def gin_kernel(m_ref, p_ref, x_ref, w_ref, b_ref, out_ref):
    """Full GIN forward for one block-diagonal stack of graphs, entirely VMEM-resident.

    m_ref : (1, NB, NB)  bf16 block-diagonal message-passing operator  A^T + (1+eps)*I
    p_ref : (1, GP, NB)  bf16 block-diagonal one-hot global_add_pool matrix
    x_ref : (1, NB, HP)  bf16 node features, zero-padded F(=11) -> HP(=128) columns
    w_ref : (8, HP, HP)  f32 weight slab [w1a', w1b, w2a', w2b, w3a', w3b, wl1, wl2]
                         (BatchNorm folded into w*a'; all entries zero-padded to HPxHP)
    b_ref : (8, HP)      f32 bias slab (matching, zero-padded)
    out   : (1, GP, HP)  f32; true logits live in column 0 of the first G rows of each
                         per-instance G_PAD row group
    """
    mf = m_ref[0].astype(jnp.float32)      # (NB, NB), reused by all three convs
    h = x_ref[0].astype(jnp.float32)       # (NB, HP)
    bv = b_ref[...]                        # (8, HP) — tiny, keep as a value

    def mlp(z, k):
        # GINConv nn: Sequential(Linear [+ BatchNorm1d folded], ReLU, Linear, ReLU)
        z = jnp.dot(z, w_ref[2 * k], preferred_element_type=jnp.float32) + bv[2 * k:2 * k + 1, :]
        z = jnp.maximum(z, 0.0)
        z = jnp.dot(z, w_ref[2 * k + 1], preferred_element_type=jnp.float32) + bv[2 * k + 1:2 * k + 2, :]
        return jnp.maximum(z, 0.0)

    # 3 x GINConv: agg_i = (1+eps)*h_i + sum_{j->i} h_j  (eps=0, folded into M).
    # forward()'s `h = h.relu()` after conv1/conv2 are no-ops: conv output already >= 0.
    for k in range(3):
        h = mlp(jnp.dot(mf, h, preferred_element_type=jnp.float32), k)

    # global_add_pool, then lin1 + ReLU, Dropout(p=0.5) eval-mode identity, lin2.
    pooled = jnp.dot(p_ref[0].astype(jnp.float32), h, preferred_element_type=jnp.float32)
    z = jnp.dot(pooled, w_ref[6], preferred_element_type=jnp.float32) + bv[6:7, :]
    z = jnp.maximum(z, 0.0)
    out_ref[0] = jnp.dot(z, w_ref[7], preferred_element_type=jnp.float32) + bv[7:8, :]


def gin_forward(m, p, x, w_slab, b_slab):
    """m:(NBLK,NB,NB) p:(NBLK,GP,NB) x:(NBLK,NB,HP) w:(8,HP,HP) b:(8,HP) -> (NBLK,GP,HP)."""
    nblk, nb, _ = m.shape
    gp = p.shape[1]
    hp = w_slab.shape[-1]
    return pl.pallas_call(
        gin_kernel,
        out_shape=jax.ShapeDtypeStruct((nblk, gp, hp), jnp.float32),
        grid=(nblk,),
        in_specs=[
            pl.BlockSpec((1, nb, nb), lambda i: (i, 0, 0)),
            pl.BlockSpec((1, gp, nb), lambda i: (i, 0, 0)),
            pl.BlockSpec((1, nb, hp), lambda i: (i, 0, 0)),
            pl.BlockSpec((8, hp, hp), lambda i: (0, 0, 0)),   # grid-invariant weights
            pl.BlockSpec((8, hp), lambda i: (0, 0)),          # grid-invariant biases
        ],
        out_specs=pl.BlockSpec((1, gp, hp), lambda i: (i, 0, 0)),
        compiler_params=pltpu.CompilerParams(dimension_semantics=("parallel",)),
    )(m, p, x, w_slab, b_slab)


# ----------------------- parameter construction (deterministic) -----------------------

def linear_params(key, fan_in, fan_out):
    k1, k2 = jax.random.split(key)
    bound = 1.0 / np.sqrt(fan_in)
    w = jax.random.uniform(k1, (fan_in, fan_out), jnp.float32, -bound, bound)
    b = jax.random.uniform(k2, (1, fan_out), jnp.float32, -bound, bound)
    return w, b


def bn_params(key, dim, eps=1e-5):
    k1, k2, k3, k4 = jax.random.split(key, 4)
    gamma = jax.random.uniform(k1, (1, dim), jnp.float32, 0.5, 1.5)
    beta = jax.random.uniform(k2, (1, dim), jnp.float32, -0.1, 0.1)
    running_mean = jax.random.uniform(k3, (1, dim), jnp.float32, -0.1, 0.1)
    running_var = jax.random.uniform(k4, (1, dim), jnp.float32, 0.5, 1.5)
    scale = gamma / jnp.sqrt(running_var + eps)
    shift = beta - running_mean * scale
    return scale, shift


def fold_bn(w, b, scale, shift):
    """Fold eval-mode BatchNorm1d into the preceding Linear."""
    return w * scale, b * scale + shift


# ----------------------------- pure-JAX reference -------------------------------------

def gin_reference(m, p, x, raw):
    (w1a, b1a, s1, t1, w1b, b1b,
     w2a, b2a, s2, t2, w2b, b2b,
     w3a, b3a, s3, t3, w3b, b3b,
     wl1, bl1, wl2, bl2) = raw

    def conv(h, wa, ba, sc, sh, wb, bb):
        agg = m @ h
        z = jnp.maximum((agg @ wa + ba) * sc + sh, 0.0)
        return jnp.maximum(z @ wb + bb, 0.0)

    h = conv(x, w1a, b1a, s1, t1, w1b, b1b)
    h = conv(h, w2a, b2a, s2, t2, w2b, b2b)
    h = conv(h, w3a, b3a, s3, t3, w3b, b3b)
    pooled = p @ h
    z = jnp.maximum(pooled @ wl1 + bl1, 0.0)
    return z @ wl2 + bl2


# --------------------------------------- main -----------------------------------------

if __name__ == "__main__":
    B = 4                        # independent batched-graph instances
    N, F, G = 24, 11, 2          # nodes / input feature dim / graphs per instance
    H = 32                       # dim_h of the module
    HP = 128                     # lane-padded feature/hidden width (zero-padded, exact)
    G_PAD = 8                    # per-instance pooled-row padding (sublane multiple)
    NUM_BLOCKS = 2               # grid steps; 2 keeps both v7x TensorCores busy.
                                 # Set to 1 on single-TC v5e/v6e for a full collapse.
    assert B % NUM_BLOCKS == 0
    B_BLK = B // NUM_BLOCKS      # instances stacked block-diagonally per grid step
    NB = B_BLK * N               # nodes per block (48)
    GP = B_BLK * G_PAD           # pooled rows per block (16)
    E_PER_GRAPH = 24

    key = jax.random.PRNGKey(0)
    k_graph, k_param = jax.random.split(key)

    # --- synthetic batched graphs: B instances, each 2 graphs of 12 nodes -------------
    batch_vec = jnp.concatenate([jnp.zeros((12,), jnp.int32), jnp.ones((12,), jnp.int32)])
    p_single = (batch_vec[None, :] == jnp.arange(G)[:, None]).astype(jnp.float32)  # (G, N)

    gkeys = jax.random.split(k_graph, B)
    ms, xs = [], []
    for bi in range(B):
        ks = jax.random.split(gkeys[bi], 5)
        src0 = jax.random.randint(ks[0], (E_PER_GRAPH,), 0, 12)
        dst0 = jax.random.randint(ks[1], (E_PER_GRAPH,), 0, 12)
        src1 = jax.random.randint(ks[2], (E_PER_GRAPH,), 12, 24)
        dst1 = jax.random.randint(ks[3], (E_PER_GRAPH,), 12, 24)
        src = jnp.concatenate([src0, src1])
        dst = jnp.concatenate([dst0, dst1])
        # dense message-passing operator: M[i, j] = #edges j->i, plus (1+eps)*I, eps=0
        mm = jnp.zeros((N, N), jnp.float32).at[dst, src].add(1.0) + jnp.eye(N, dtype=jnp.float32)
        ms.append(mm)
        # node features quantized to bf16 (reference consumes the identical values)
        xf = jax.random.normal(ks[4], (N, F), jnp.float32)
        xs.append(xf.astype(jnp.bfloat16).astype(jnp.float32))
    m_b = jnp.stack(ms)                                   # (B, N, N) small ints: bf16-exact
    x_b = jnp.stack(xs)                                   # (B, N, F) bf16-representable
    p_b = jnp.broadcast_to(p_single, (B, G, N))           # (B, G, N) one-hot: bf16-exact

    # --- block-diagonal stacking of B_BLK instances per grid step ---------------------
    m_blk = np.zeros((NUM_BLOCKS, NB, NB), np.float32)
    p_blk = np.zeros((NUM_BLOCKS, GP, NB), np.float32)
    x_blk = np.zeros((NUM_BLOCKS, NB, HP), np.float32)
    m_np, p_np, x_np = np.asarray(m_b), np.asarray(p_b), np.asarray(x_b)
    for blk in range(NUM_BLOCKS):
        for j in range(B_BLK):
            bi = blk * B_BLK + j
            r = slice(j * N, (j + 1) * N)
            m_blk[blk, r, r] = m_np[bi]
            p_blk[blk, j * G_PAD:j * G_PAD + G, r] = p_np[bi]
            x_blk[blk, r, :F] = x_np[bi]
    # bf16 storage halves the per-step streamed DMA; all three are exact in bf16.
    m_blk = jnp.asarray(m_blk, dtype=jnp.bfloat16)
    p_blk = jnp.asarray(p_blk, dtype=jnp.bfloat16)
    x_blk = jnp.asarray(x_blk, dtype=jnp.bfloat16)

    # --- deterministic parameters (shapes from GIN.__init__, dim_h = 32) --------------
    pkeys = jax.random.split(k_param, 11)
    w1a, b1a = linear_params(pkeys[0], F, H)
    s1, t1 = bn_params(pkeys[1], H)
    w1b, b1b = linear_params(pkeys[2], H, H)
    w2a, b2a = linear_params(pkeys[3], H, H)
    s2, t2 = bn_params(pkeys[4], H)
    w2b, b2b = linear_params(pkeys[5], H, H)
    w3a, b3a = linear_params(pkeys[6], H, H)
    s3, t3 = bn_params(pkeys[7], H)
    w3b, b3b = linear_params(pkeys[8], H, H)
    wl1, bl1 = linear_params(pkeys[9], H, H)
    wl2, bl2 = linear_params(pkeys[10], H, 1)

    raw_params = (w1a, b1a, s1, t1, w1b, b1b,
                  w2a, b2a, s2, t2, w2b, b2b,
                  w3a, b3a, s3, t3, w3b, b3b,
                  wl1, bl1, wl2, bl2)

    # --- host-side BN folding + zero-padded slab packing (HP = 128 lanes) --------------
    w1a_f, b1a_f = fold_bn(w1a, b1a, s1, t1)
    w2a_f, b2a_f = fold_bn(w2a, b2a, s2, t2)
    w3a_f, b3a_f = fold_bn(w3a, b3a, s3, t3)

    def pad_mat(w):
        out = np.zeros((HP, HP), np.float32)
        out[:w.shape[0], :w.shape[1]] = np.asarray(w)
        return out

    def pad_vec(b):
        out = np.zeros((1, HP), np.float32)
        out[:, :b.shape[1]] = np.asarray(b)
        return out

    w_slab = jnp.asarray(np.stack([pad_mat(w1a_f), pad_mat(w1b),
                                   pad_mat(w2a_f), pad_mat(w2b),
                                   pad_mat(w3a_f), pad_mat(w3b),
                                   pad_mat(wl1), pad_mat(wl2)], axis=0))        # (8, HP, HP)
    b_slab = jnp.asarray(np.concatenate([pad_vec(b1a_f), pad_vec(b1b),
                                         pad_vec(b2a_f), pad_vec(b2b),
                                         pad_vec(b3a_f), pad_vec(b3b),
                                         pad_vec(bl1), pad_vec(bl2)], axis=0))   # (8, HP)

    # --- run kernel --------------------------------------------------------------------
    out_full = gin_forward(m_blk, p_blk, x_blk, w_slab, b_slab)   # (NUM_BLOCKS, GP, HP)
    out_full = jax.block_until_ready(out_full)
    out = np.asarray(out_full).reshape(NUM_BLOCKS, B_BLK, G_PAD, HP)[:, :, :G, :1]
    out = out.reshape(B, G, 1)                                    # (B, G, 1) logits

    # --- reference check ---------------------------------------------------------------
    ref = jax.vmap(lambda mm, pp, xx: gin_reference(mm, pp, xx, raw_params))(m_b, p_b, x_b)
    np.testing.assert_allclose(out, np.asarray(ref), rtol=1e-4, atol=1e-4)

    print("KERNEL_OK")
</pallas_src>

<mosaic_0001>
module attributes {stable_mosaic.version = 11 : i64} {
  func.func @gin_kernel(%arg0: i32, %arg1: memref<1x48x48xbf16, #tpu.memory_space<vmem>>, %arg2: memref<1x16x48xbf16, #tpu.memory_space<vmem>>, %arg3: memref<1x48x128xbf16, #tpu.memory_space<vmem>>, %arg4: memref<8x128x128xf32, #tpu.memory_space<vmem>>, %arg5: memref<8x128xf32, #tpu.memory_space<vmem>>, %arg6: memref<1x16x128xf32, #tpu.memory_space<vmem>>) attributes {dimension_semantics = [#tpu.dimension_semantics<parallel>], iteration_bounds = array<i64: 2>, scalar_prefetch = 0 : i64, scratch_operands = 0 : i64, tpu.core_type = #tpu.core_type<tc>, window_params = [{transform_indices = @transform_0, window_bounds = array<i64: 1, 48, 48>}, {transform_indices = @transform_1, window_bounds = array<i64: 1, 16, 48>}, {transform_indices = @transform_2, window_bounds = array<i64: 1, 48, 128>}, {pipeline_mode = #tpu.pipeline_mode<synchronous>, transform_indices = @transform_3, window_bounds = array<i64: 8, 128, 128>}, {pipeline_mode = #tpu.pipeline_mode<synchronous>, transform_indices = @transform_4, window_bounds = array<i64: 8, 128>}, {transform_indices = @transform_5, window_bounds = array<i64: 1, 16, 128>}]} {
    %c0 = arith.constant 0 : index
    %c0_0 = arith.constant 0 : index
    %c0_1 = arith.constant 0 : index
    %0 = vector.load %arg1[%c0, %c0_0, %c0_1] : memref<1x48x48xbf16, #tpu.memory_space<vmem>>, vector<1x48x48xbf16>
    %1 = vector.shape_cast %0 : vector<1x48x48xbf16> to vector<48x48xbf16>
    %2 = arith.extf %1 : vector<48x48xbf16> to vector<48x48xf32>
    %c0_2 = arith.constant 0 : index
    %c0_3 = arith.constant 0 : index
    %c0_4 = arith.constant 0 : index
    %3 = vector.load %arg3[%c0_2, %c0_3, %c0_4] : memref<1x48x128xbf16, #tpu.memory_space<vmem>>, vector<1x48x128xbf16>
    %4 = vector.shape_cast %3 : vector<1x48x128xbf16> to vector<48x128xbf16>
    %5 = arith.extf %4 : vector<48x128xbf16> to vector<48x128xf32>
    %c0_5 = arith.constant 0 : index
    %c0_6 = arith.constant 0 : index
    %6 = vector.load %arg5[%c0_5, %c0_6] : memref<8x128xf32, #tpu.memory_space<vmem>>, vector<8x128xf32>
    %cst = arith.constant dense<0.000000e+00> : vector<48x128xf32>
    %7 = tpu.matmul %2, %5, %cst {dimension_numbers = #tpu.dot_dimension_numbers<[1], [0], [0], [1], [0, 0, 1, 1], [], []>} : vector<48x48xf32>, vector<48x128xf32>, vector<48x128xf32> -> vector<48x128xf32>
    %c0_7 = arith.constant 0 : index
    %c0_8 = arith.constant 0 : index
    %c0_9 = arith.constant 0 : index
    %8 = vector.load %arg4[%c0_7, %c0_8, %c0_9] : memref<8x128x128xf32, #tpu.memory_space<vmem>>, vector<1x128x128xf32>
    %9 = vector.shape_cast %8 : vector<1x128x128xf32> to vector<128x128xf32>
    %cst_10 = arith.constant dense<0.000000e+00> : vector<48x128xf32>
    %10 = tpu.matmul %7, %9, %cst_10 {dimension_numbers = #tpu.dot_dimension_numbers<[1], [0], [0], [1], [0, 0, 1, 1], [], []>} : vector<48x128xf32>, vector<128x128xf32>, vector<48x128xf32> -> vector<48x128xf32>
    %11 = vector.extract_strided_slice %6 {offsets = [0, 0], sizes = [1, 128], strides = [1, 1]} : vector<8x128xf32> to vector<1x128xf32>
    %12 = vector.broadcast %11 : vector<1x128xf32> to vector<48x128xf32>
    %13 = arith.addf %10, %12 : vector<48x128xf32>
    %cst_11 = arith.constant 0.000000e+00 : f32
    %14 = vector.broadcast %cst_11 : f32 to vector<48x128xf32>
    %15 = arith.maximumf %13, %14 : vector<48x128xf32>
    %c1 = arith.constant 1 : index
    %c0_12 = arith.constant 0 : index
    %c0_13 = arith.constant 0 : index
    %16 = vector.load %arg4[%c1, %c0_12, %c0_13] : memref<8x128x128xf32, #tpu.memory_space<vmem>>, vector<1x128x128xf32>
    %17 = vector.shape_cast %16 : vector<1x128x128xf32> to vector<128x128xf32>
    %cst_14 = arith.constant dense<0.000000e+00> : vector<48x128xf32>
    %18 = tpu.matmul %15, %17, %cst_14 {dimension_numbers = #tpu.dot_dimension_numbers<[1], [0], [0], [1], [0, 0, 1, 1], [], []>} : vector<48x128xf32>, vector<128x128xf32>, vector<48x128xf32> -> vector<48x128xf32>
    %19 = vector.extract_strided_slice %6 {offsets = [1, 0], sizes = [1, 128], strides = [1, 1]} : vector<8x128xf32> to vector<1x128xf32>
    %20 = vector.broadcast %19 : vector<1x128xf32> to vector<48x128xf32>
    %21 = arith.addf %18, %20 : vector<48x128xf32>
    %cst_15 = arith.constant 0.000000e+00 : f32
    %22 = vector.broadcast %cst_15 : f32 to vector<48x128xf32>
    %23 = arith.maximumf %21, %22 : vector<48x128xf32>
    %cst_16 = arith.constant dense<0.000000e+00> : vector<48x128xf32>
    %24 = tpu.matmul %2, %23, %cst_16 {dimension_numbers = #tpu.dot_dimension_numbers<[1], [0], [0], [1], [0, 0, 1, 1], [], []>} : vector<48x48xf32>, vector<48x128xf32>, vector<48x128xf32> -> vector<48x128xf32>
    %c2 = arith.constant 2 : index
    %c0_17 = arith.constant 0 : index
    %c0_18 = arith.constant 0 : index
    %25 = vector.load %arg4[%c2, %c0_17, %c0_18] : memref<8x128x128xf32, #tpu.memory_space<vmem>>, vector<1x128x128xf32>
    %26 = vector.shape_cast %25 : vector<1x128x128xf32> to vector<128x128xf32>
    %cst_19 = arith.constant dense<0.000000e+00> : vector<48x128xf32>
    %27 = tpu.matmul %24, %26, %cst_19 {dimension_numbers = #tpu.dot_dimension_numbers<[1], [0], [0], [1], [0, 0, 1, 1], [], []>} : vector<48x128xf32>, vector<128x128xf32>, vector<48x128xf32> -> vector<48x128xf32>
    %28 = vector.extract_strided_slice %6 {offsets = [2, 0], sizes = [1, 128], strides = [1, 1]} : vector<8x128xf32> to vector<1x128xf32>
    %29 = vector.broadcast %28 : vector<1x128xf32> to vector<48x128xf32>
    %30 = arith.addf %27, %29 : vector<48x128xf32>
    %cst_20 = arith.constant 0.000000e+00 : f32
    %31 = vector.broadcast %cst_20 : f32 to vector<48x128xf32>
    %32 = arith.maximumf %30, %31 : vector<48x128xf32>
    %c3 = arith.constant 3 : index
    %c0_21 = arith.constant 0 : index
    %c0_22 = arith.constant 0 : index
    %33 = vector.load %arg4[%c3, %c0_21, %c0_22] : memref<8x128x128xf32, #tpu.memory_space<vmem>>, vector<1x128x128xf32>
    %34 = vector.shape_cast %33 : vector<1x128x128xf32> to vector<128x128xf32>
    %cst_23 = arith.constant dense<0.000000e+00> : vector<48x128xf32>
    %35 = tpu.matmul %32, %34, %cst_23 {dimension_numbers = #tpu.dot_dimension_numbers<[1], [0], [0], [1], [0, 0, 1, 1], [], []>} : vector<48x128xf32>, vector<128x128xf32>, vector<48x128xf32> -> vector<48x128xf32>
    %36 = vector.extract_strided_slice %6 {offsets = [3, 0], sizes = [1, 128], strides = [1, 1]} : vector<8x128xf32> to vector<1x128xf32>
    %37 = vector.broadcast %36 : vector<1x128xf32> to vector<48x128xf32>
    %38 = arith.addf %35, %37 : vector<48x128xf32>
    %cst_24 = arith.constant 0.000000e+00 : f32
    %39 = vector.broadcast %cst_24 : f32 to vector<48x128xf32>
    %40 = arith.maximumf %38, %39 : vector<48x128xf32>
    %cst_25 = arith.constant dense<0.000000e+00> : vector<48x128xf32>
    %41 = tpu.matmul %2, %40, %cst_25 {dimension_numbers = #tpu.dot_dimension_numbers<[1], [0], [0], [1], [0, 0, 1, 1], [], []>} : vector<48x48xf32>, vector<48x128xf32>, vector<48x128xf32> -> vector<48x128xf32>
    %c4 = arith.constant 4 : index
    %c0_26 = arith.constant 0 : index
    %c0_27 = arith.constant 0 : index
    %42 = vector.load %arg4[%c4, %c0_26, %c0_27] : memref<8x128x128xf32, #tpu.memory_space<vmem>>, vector<1x128x128xf32>
    %43 = vector.shape_cast %42 : vector<1x128x128xf32> to vector<128x128xf32>
    %cst_28 = arith.constant dense<0.000000e+00> : vector<48x128xf32>
    %44 = tpu.matmul %41, %43, %cst_28 {dimension_numbers = #tpu.dot_dimension_numbers<[1], [0], [0], [1], [0, 0, 1, 1], [], []>} : vector<48x128xf32>, vector<128x128xf32>, vector<48x128xf32> -> vector<48x128xf32>
    %45 = vector.extract_strided_slice %6 {offsets = [4, 0], sizes = [1, 128], strides = [1, 1]} : vector<8x128xf32> to vector<1x128xf32>
    %46 = vector.broadcast %45 : vector<1x128xf32> to vector<48x128xf32>
    %47 = arith.addf %44, %46 : vector<48x128xf32>
    %cst_29 = arith.constant 0.000000e+00 : f32
    %48 = vector.broadcast %cst_29 : f32 to vector<48x128xf32>
    %49 = arith.maximumf %47, %48 : vector<48x128xf32>
    %c5 = arith.constant 5 : index
    %c0_30 = arith.constant 0 : index
    %c0_31 = arith.constant 0 : index
    %50 = vector.load %arg4[%c5, %c0_30, %c0_31] : memref<8x128x128xf32, #tpu.memory_space<vmem>>, vector<1x128x128xf32>
    %51 = vector.shape_cast %50 : vector<1x128x128xf32> to vector<128x128xf32>
    %cst_32 = arith.constant dense<0.000000e+00> : vector<48x128xf32>
    %52 = tpu.matmul %49, %51, %cst_32 {dimension_numbers = #tpu.dot_dimension_numbers<[1], [0], [0], [1], [0, 0, 1, 1], [], []>} : vector<48x128xf32>, vector<128x128xf32>, vector<48x128xf32> -> vector<48x128xf32>
    %53 = vector.extract_strided_slice %6 {offsets = [5, 0], sizes = [1, 128], strides = [1, 1]} : vector<8x128xf32> to vector<1x128xf32>
    %54 = vector.broadcast %53 : vector<1x128xf32> to vector<48x128xf32>
    %55 = arith.addf %52, %54 : vector<48x128xf32>
    %cst_33 = arith.constant 0.000000e+00 : f32
    %56 = vector.broadcast %cst_33 : f32 to vector<48x128xf32>
    %57 = arith.maximumf %55, %56 : vector<48x128xf32>
    %c0_34 = arith.constant 0 : index
    %c0_35 = arith.constant 0 : index
    %c0_36 = arith.constant 0 : index
    %58 = vector.load %arg2[%c0_34, %c0_35, %c0_36] : memref<1x16x48xbf16, #tpu.memory_space<vmem>>, vector<1x16x48xbf16>
    %59 = vector.shape_cast %58 : vector<1x16x48xbf16> to vector<16x48xbf16>
    %60 = arith.extf %59 : vector<16x48xbf16> to vector<16x48xf32>
    %cst_37 = arith.constant dense<0.000000e+00> : vector<16x128xf32>
    %61 = tpu.matmul %60, %57, %cst_37 {dimension_numbers = #tpu.dot_dimension_numbers<[1], [0], [0], [1], [0, 0, 1, 1], [], []>} : vector<16x48xf32>, vector<48x128xf32>, vector<16x128xf32> -> vector<16x128xf32>
    %c6 = arith.constant 6 : index
    %c0_38 = arith.constant 0 : index
    %c0_39 = arith.constant 0 : index
    %62 = vector.load %arg4[%c6, %c0_38, %c0_39] : memref<8x128x128xf32, #tpu.memory_space<vmem>>, vector<1x128x128xf32>
    %63 = vector.shape_cast %62 : vector<1x128x128xf32> to vector<128x128xf32>
    %cst_40 = arith.constant dense<0.000000e+00> : vector<16x128xf32>
    %64 = tpu.matmul %61, %63, %cst_40 {dimension_numbers = #tpu.dot_dimension_numbers<[1], [0], [0], [1], [0, 0, 1, 1], [], []>} : vector<16x128xf32>, vector<128x128xf32>, vector<16x128xf32> -> vector<16x128xf32>
    %65 = vector.extract_strided_slice %6 {offsets = [6, 0], sizes = [1, 128], strides = [1, 1]} : vector<8x128xf32> to vector<1x128xf32>
    %66 = vector.broadcast %65 : vector<1x128xf32> to vector<16x128xf32>
    %67 = arith.addf %64, %66 : vector<16x128xf32>
    %cst_41 = arith.constant 0.000000e+00 : f32
    %68 = vector.broadcast %cst_41 : f32 to vector<16x128xf32>
    %69 = arith.maximumf %67, %68 : vector<16x128xf32>
    %c7 = arith.constant 7 : index
    %c0_42 = arith.constant 0 : index
    %c0_43 = arith.constant 0 : index
    %70 = vector.load %arg4[%c7, %c0_42, %c0_43] : memref<8x128x128xf32, #tpu.memory_space<vmem>>, vector<1x128x128xf32>
    %71 = vector.shape_cast %70 : vector<1x128x128xf32> to vector<128x128xf32>
    %cst_44 = arith.constant dense<0.000000e+00> : vector<16x128xf32>
    %72 = tpu.matmul %69, %71, %cst_44 {dimension_numbers = #tpu.dot_dimension_numbers<[1], [0], [0], [1], [0, 0, 1, 1], [], []>} : vector<16x128xf32>, vector<128x128xf32>, vector<16x128xf32> -> vector<16x128xf32>
    %73 = vector.extract_strided_slice %6 {offsets = [7, 0], sizes = [1, 128], strides = [1, 1]} : vector<8x128xf32> to vector<1x128xf32>
    %74 = vector.broadcast %73 : vector<1x128xf32> to vector<16x128xf32>
    %75 = arith.addf %72, %74 : vector<16x128xf32>
    %c0_45 = arith.constant 0 : index
    %c0_46 = arith.constant 0 : index
    %c0_47 = arith.constant 0 : index
    %76 = vector.load %arg6[%c0_45, %c0_46, %c0_47] : memref<1x16x128xf32, #tpu.memory_space<vmem>>, vector<1x16x128xf32>
    %77 = vector.shape_cast %76 : vector<1x16x128xf32> to vector<16x128xf32>
    %78 = vector.shape_cast %75 : vector<16x128xf32> to vector<1x16x128xf32>
    tpu.vector_store %arg6[%c0_45, %c0_46, %c0_47], %78 {strides = array<i32>} : memref<1x16x128xf32, #tpu.memory_space<vmem>>, vector<1x16x128xf32>,
    return
  }
  func.func @transform_0(%arg0: i32) -> (i32, i32, i32) {
    %c0_i32 = arith.constant 0 : i32
    %c0_i32_0 = arith.constant 0 : i32
    %c0_i32_1 = arith.constant 0 : i32
    return %arg0, %c0_i32, %c0_i32_0 : i32, i32, i32
  }
  func.func @transform_1(%arg0: i32) -> (i32, i32, i32) {
    %c0_i32 = arith.constant 0 : i32
    %c0_i32_0 = arith.constant 0 : i32
    %c0_i32_1 = arith.constant 0 : i32
    return %arg0, %c0_i32, %c0_i32_0 : i32, i32, i32
  }
  func.func @transform_2(%arg0: i32) -> (i32, i32, i32) {
    %c0_i32 = arith.constant 0 : i32
    %c0_i32_0 = arith.constant 0 : i32
    %c0_i32_1 = arith.constant 0 : i32
    return %arg0, %c0_i32, %c0_i32_0 : i32, i32, i32
  }
  func.func @transform_3(%arg0: i32) -> (i32, i32, i32) {
    %c0_i32 = arith.constant 0 : i32
    %c0_i32_0 = arith.constant 0 : i32
    %c0_i32_1 = arith.constant 0 : i32
    %c0_i32_2 = arith.constant 0 : i32
    return %c0_i32, %c0_i32_0, %c0_i32_1 : i32, i32, i32
  }
  func.func @transform_4(%arg0: i32) -> (i32, i32) {
    %c0_i32 = arith.constant 0 : i32
    %c0_i32_0 = arith.constant 0 : i32
    %c0_i32_1 = arith.constant 0 : i32
    return %c0_i32, %c0_i32_0 : i32, i32
  }
  func.func @transform_5(%arg0: i32) -> (i32, i32, i32) {
    %c0_i32 = arith.constant 0 : i32
    %c0_i32_0 = arith.constant 0 : i32
    %c0_i32_1 = arith.constant 0 : i32
    return %arg0, %c0_i32, %c0_i32_0 : i32, i32, i32
  }
}

</mosaic_0001>

<bundles_post_ra>
// kernel: tpu_custom_call.1
= control target key start
LH: loop header
LB: loop body
LE: loop exit
PB: predicated region body
PF: predicated region fallthrough
CT: control target
= control target key end

     0   :  { %s1840_s0 = inlined_call_operand.hbm [shape: bf16[2,48,48], index: 0, kind: input, shape index: {}]   ;;  %s1841_s1 = inlined_call_operand.hbm [shape: bf16[2,16,48], index: 1, kind: input, shape index: {}]   ;;  %s1842_s2 = inlined_call_operand.hbm [shape: bf16[2,48,128], index: 2, kind: input, shape index: {}]   ;;  %s1843_s3 = inlined_call_operand.hbm [shape: f32[8,128,128], index: 3, kind: input, shape index: {}]   ;;  %s1844_s4 = inlined_call_operand.hbm [shape: f32[8,128], index: 4, kind: input, shape index: {}]   ;;  %s1845_s5 = inlined_call_operand.hbm [shape: f32[2,16,128], index: 5, kind: output, shape index: {}]  }
   0x1   :  { %1854 = sst [smem:[#allocation19_spill]] %s1841_s1 }
   0x2   :  { %1855 = sst [smem:[#allocation20_spill]] %s1843_s3 }
   0x3   :  { %10 = vsyncpa [#allocation3], 0 }
   0x4   :  { %12 = vsyncpa [#allocation3 + $0x1], 0 }
   0x5   :  { %13 = vsyncpa [#allocation6], 0 }
   0x6   :  { %15 = vsyncpa [#allocation6 + $0x1], 0 }
   0x7   :  { %16 = vsyncpa [#allocation9], 0 }
   0x8   :  { %17 = vsyncpa [#allocation4], 0 }
   0x9   :  { %19 = vsyncpa [#allocation4 + $0x1], 0  ;;  %s1561_s18 = smov 0   ;;  %s1563_s19 = smov 0  }
   0xa   :  { %s1565_s20 = smov 0   ;;  %s1567_s21 = smov 0  }
   0xb LB: > { %1856 = sst [smem:[#allocation16_spill]] %s1517_s20  ;;  %s1582_s22 = sadd.s32 4294967295, %s1521_s21   ;;  %s1521_s21 = sphi %s1567_s21, %s1872_s21   ;;  %s1517_s20 = sphi %s1565_s20, %s1874_s20   ;;  %s1513_s19 = sphi %s1563_s19, %s1876_s19   ;;  %s1509_s18 = sphi %s1561_s18, %s1875_s18  }
   0xc   : > { %s1129_s23 = sadd.s32 4294967294, %s1521_s21   ;;  %p45_p0 = scmp.ne.s32.totalorder %s1513_s19, %s1509_s18 }
   0xd   : > { %p1849_p1 = scmp.eq.s32.totalorder %s1582_s22, 0  ;;  %p163_p2 = scmp.eq.s32.totalorder %s1582_s22, 1 }
   0xe   : > { %p169_p3 = scmp.eq.s32.totalorder %s1129_s23, 1  ;;  %p1130_p5 = scmp.ge.s32.totalorder %s1521_s21, 1 }
   0xf   : > { %p1591_p4 = por %p1849_p1, %p45_p0  ;;  %p176_p7 = scmp.lt.s32.totalorder %s1521_s21, 3 }
  0x10   : > { %p1596_p6 = por %p169_p3, %p45_p0  ;;  %s1859_s3 = sld [smem:[#allocation20_spill]] }
  0x11   : > { %p1604_p8 = pnand %p1130_p5, %p176_p7  ;;  %s1523_s30 = smov [#allocation8]  }
  0x12   : > { %s189_s6 = sshll.u32 %s1523_s30, 4  ;;  %s1618_s8 = sadd.s32 1, %s1521_s21   ;;  %s190_s6 = int_to_ptr.vmem [resolvable:$true] %s189_s6 }
  0x13   : > { %p1230_p9 = pneg %p1604_p8  ;;  %1862 = sst [smem:[#allocation17_spill]] %s1618_s8 }
  0x14   : > { %s1524_s9 = smov 128   ;;  %s1525_s10 = smov 8  }
  0x15   : > { %p1612_p10 = pnand %p1230_p9, %p1849_p1  ;;  %s29_s11 = ssub.s32 %s1521_s21, %s1618_s8 }
  0x16   : > { %s187_s28 = sshll.u32 %s1859_s3, 4  ;;  %s32_s12 = sadd.s32 1, %s1517_s20  ;;  %s188_s28 = int_to_ptr.hbm [resolvable:$true] %s187_s28 }
  0x17   : > { %1233 = dma.hbm_to_vmem [thread:$0]  (!%p1612_p10), %s188_s28, 16384, %s190_s6, [#allocation9], %s1524_s9, %s1524_s9, %s1525_s10  }
  0x18   : > { %p30_p12 = scmp.eq.s32.totalorder %s29_s11, 0  ;;  %p39_p13 = scmp.ne.s32.totalorder %s1517_s20, %s1513_s19 }
  0x19   : > { %p40_p0 = scmp.eq.s32.totalorder %s1521_s21, 0  ;;  %p1253_p3 = scmp.lt.s32.totalorder %s1521_s21, 2 }
  0x1a   : > { %s1630_s13 = scalar_select %p30_p12, %s1517_s20, %s32_s12  }
  0x1b   : > { %p41_p5 = por %p40_p0, %p39_p13  ;;  %p1634_p7 = por %p163_p2, %p39_p13 }
  0x1c   : > { %1863 = sst [smem:[#allocation18_spill]] %s1630_s13  ;;  %s1639_s15 = sand.u32 1, %s1517_s20  }
  0x1d   : > { %p1641_p9 = pnand %p1253_p3, %p41_p5  ;;  %s237_s17 = sand.u32 1, %s1521_s21  }
  0x1e   : > { %s1135_s23 = sshll.u32 %s1639_s15, 3  ;;  %s1169_s26 = sshll.u32 %s1521_s21, 3 }
  0x1f   : > { %s1866_s1 = sld [smem:[#allocation19_spill]]  ;;  %s241_s6 = scalar_lea.vmem [#allocation5], %s1135_s23 }
  0x20   : > { %s249_s9 = sshll.u32 %s241_s6, 4  ;;  %s202_s3 = sshll.u32 %s1844_s4, 4  ;;  %s250_s9 = int_to_ptr.vmem [resolvable:$true] %s249_s9  ;;  %s203_s3 = int_to_ptr.hbm [resolvable:$true] %s202_s3 }
  0x21   : > { %s1654_s13 = scalar_lea.sflag [#allocation6], %s237_s17  ;;  %p1331_p12 = pneg %p1641_p9 }
  0x25   : > { %s246_s30 = scalar_lea.hbm %s1866_s1, %s1169_s26  ;;  %s1334_s27 = scalar_lea.hbm %s1866_s1, 16 }
  0x26   : > { %s247_s10 = sshll.u32 %s246_s30, 4  ;;  %s248_s10 = int_to_ptr.hbm [resolvable:$true] %s247_s10 }
  0x27   : > { %s1327_s20 = sshra.s32 %s248_s10, 4  ;;  %s1328_s20 = int_to_ptr.hbm [resolvable:$true] %s1327_s20 }
  0x28   : > { %s1329_s8 = scalar_lea.hbm %s1328_s20, 8  ;;  %p1335_p3 = scmp.lt.s32.totalorder %s1328_s20, %s1866_s1 }
  0x29   : > { %p1330_p2 = scmp.ne.s32.totalorder %s1328_s20, %s1329_s8  ;;  %p1336_p5 = scmp.lt.s32.totalorder %s1334_s27, %s1329_s8 }
  0x2b   : > { %p1332_p13 = pnand %p1331_p12, %p1330_p2  ;;  %p1337_p11 = por %p1336_p5, %p1335_p3 }
  0x2d   : > { %p1333_p0 = pneg %p1332_p13 }
  0x2f   : > { %p1338_p1 = pnand %p1337_p11, %p1333_p0 }
  0x31   : > { %1341 = shalt.err (!%p1338_p1)
}
  0x32   : > { %s1850_s17 = smov 64   ;;  %s1852_s6 = smov 4  }
  0x33   : > { %1243 = dma.hbm_to_vmem [thread:$0]  (!%p1641_p9), %s248_s10, 128, %s250_s9, %s1654_s13, %s1850_s17, %s1850_s17, %s1852_s6  }
  0x34   : > { %s1528_s20 = smov [#allocation10]   ;;  %s1209_s11 = smul.u32 24, %s1639_s15 }
  0x35   : > { %s204_s8 = sshll.u32 %s1528_s20, 4  ;;  %s1210_s12 = smul.u32 24, %s1521_s21  ;;  %s205_s8 = int_to_ptr.vmem [resolvable:$true] %s204_s8 }
  0x36   : > { %1236 = dma.hbm_to_vmem [thread:$0]  (!%p1612_p10), %s203_s3, 128, %s205_s8, [#allocation9]  }
  0x37   : > { %s219_s23 = scalar_lea.vmem [#allocation2], %s1209_s11  ;;  %s224_s30 = scalar_lea.hbm %s1840_s0, %s1210_s12 }
  0x38   : > { %s227_s26 = sshll.u32 %s219_s23, 4  ;;  %s225_s1 = sshll.u32 %s224_s30, 4  ;;  %s228_s26 = int_to_ptr.vmem [resolvable:$true] %s227_s26  ;;  %s226_s1 = int_to_ptr.hbm [resolvable:$true] %s225_s1 }
  0x39   : > { %s268_s17 = scalar_lea.hbm %s1842_s2, %s1210_s12  ;;  %s216_s6 = scalar_lea.sflag [#allocation3], %s1639_s15 }
  0x3a   : > { %s269_s20 = sshll.u32 %s268_s17, 4  ;;  %s1387_s7 = sshra.s32 %s226_s1, 4  ;;  %s1388_s7 = int_to_ptr.hbm [resolvable:$true] %s1387_s7  ;;  %s270_s20 = int_to_ptr.hbm [resolvable:$true] %s269_s20 }
  0x3b   : > { %s1389_s3 = scalar_lea.hbm %s1388_s7, 24  ;;  %s1394_s27 = scalar_lea.hbm %s1840_s0, 48 }
  0x3c   : > { %p1390_p1 = scmp.ne.s32.totalorder %s1388_s7, %s1389_s3  ;;  %p1395_p2 = scmp.lt.s32.totalorder %s1388_s7, %s1840_s0 }
  0x3d   : > { %p1396_p13 = scmp.lt.s32.totalorder %s1394_s27, %s1389_s3 }
  0x3e   : > { %p1392_p10 = pnand %p1390_p1, %p1331_p12 }
  0x3f   : > { %p1397_p0 = por %p1396_p13, %p1395_p2 }
  0x40   : > { %p1393_p11 = pneg %p1392_p10 }
  0x42   : > { %p1398_p3 = pnand %p1397_p0, %p1393_p11 }
  0x44   : > { %1401 = shalt.err (!%p1398_p3)
}
  0x45   : > { %s1867_s17 = smov 4   ;;  %s1868_s12 = smov 64  }
  0x46   : > { %1240 = dma.hbm_to_vmem [thread:$0]  (!%p1641_p9), %s226_s1, 384, %s228_s26, %s216_s6, %s1868_s12, %s1868_s12, %s1867_s17  }
  0x47   : > { %s263_s9 = scalar_lea.vmem [#allocation7], %s1209_s11  ;;  %s1417_s8 = sshra.s32 %s270_s20, 4  ;;  %s1418_s8 = int_to_ptr.hbm [resolvable:$true] %s1417_s8 }
  0x48   : > { %s271_s10 = sshll.u32 %s263_s9, 4  ;;  %s1419_s7 = scalar_lea.hbm %s1418_s8, 24  ;;  %s272_s10 = int_to_ptr.vmem [resolvable:$true] %s271_s10 }
  0x49   : > { %p1420_p5 = scmp.ne.s32.totalorder %s1418_s8, %s1419_s7  ;;  %s1424_s27 = scalar_lea.hbm %s1842_s2, 48 }
  0x4a   : > { %p1425_p11 = scmp.lt.s32.totalorder %s1418_s8, %s1842_s2  ;;  %p1426_p2 = scmp.lt.s32.totalorder %s1424_s27, %s1419_s7 }
  0x4b   : > { %p1422_p1 = pnand %p1420_p5, %p1331_p12 }
  0x4c   : > { %p1427_p13 = por %p1426_p2, %p1425_p11 }
  0x4d   : > { %p1423_p10 = pneg %p1422_p1 }
  0x4f   : > { %p1428_p0 = pnand %p1427_p13, %p1423_p10 }
  0x51   : > { %1431 = shalt.err (!%p1428_p0)
}
  0x52   : > { %1246 = dma.hbm_to_vmem [thread:$0]  (!%p1641_p9), %s270_s20, 384, %s272_s10, %s1654_s13, %s1868_s12, %s1868_s12, %s1867_s17  }
  0x53   : > { %283 = sbr.rel (%p1604_p8) target bundleno = 1852 (0x73c), region = 40  ;;  %s1720_s1 = sand.u32 (!%p1604_p8), 1, %s1513_s19  }
  0x54   : > { %s1213_s15 = smul.u32 (!%p1604_p8), 24, %s1720_s1  ;;  %s286_s6 = scalar_lea.sflag (!%p1604_p8), [#allocation3], %s1720_s1 }
  0x56   : > { %s1724_s11 = scalar_lea.vmem (!%p1604_p8), [#allocation2], %s1213_s15 }
  0x58   : > { %1492 = dma.done.wait (%p1591_p4), %s286_s6, 384  }
  0x59   : > { %1494 = vsyncadd (%p1591_p4), %s286_s6, 4294966912  ;;  %s295_s29 = sand.u32 1, %s1582_s22   ;;  %s1140_s13 = sshll.u32 %s1720_s1, 3 }
  0x5a   : > { %s296_s16 = scalar_lea.sflag [#allocation6], %s295_s29  ;;  %s1732_s26 = scalar_lea.vmem [#allocation5], %s1140_s13 }
  0x5b   : > { %1496 = dma.done.wait (%p1591_p4), %s296_s16, 512  }
  0x5c   : > { %1498 = vsyncadd (%p1591_p4), %s296_s16, 4294966784  ;;  %s309_s20 = scalar_lea.vmem [#allocation7], %s1213_s15  ;;  %p1869_p8 = scmp.eq.s32.totalorder %s1582_s22, 0 }
  0x5e   : > { %1500 = dma.done.wait (%p1869_p8), [#allocation9], 16512   ;;  %p1870_p9 = pmov %p1869_p8 }
  0x5f   : > { %v1202_v0 = vld [vmem:[%s309_s20 + $0x10] sm:$0xff]   ;;  %v1201_v1 = vld [vmem:[%s309_s20 + $0x8] sm:$0xff]   ;;  %v1184_v5 = vld [vmem:[%s309_s20] sm:$0xff]   ;;  %vm382_vm0 = vcmask 392192   ;;  %s1143_s24 = sshll.u32 %s1720_s1, 4  ;;  %s1170_s17 = sshll.u32 %s1582_s22, 4 }
  0x60   : > { %1502 = vsyncadd (%p1870_p9), [#allocation9], 4294950784  ;;  %v1194_v2 = vunpack.c.h.bf16 %v1202_v0  ;;  %v1193_v3 = vunpack.c.l.bf16 %v1202_v0  ;;  %v1190_v4 = vunpack.c.h.bf16 %v1201_v1  ;;  %v1189_v6 = vunpack.c.l.bf16 %v1201_v1  ;;  %v451_v7 = vld [vmem:[#allocation8 + $0x78] sm:$0xff]  ;;  %v1172_v9 = vld [vmem:[%s1724_s11] sm:$0xff]   ;;  %s990_s10 = scalar_lea.hbm %s1845_s5, %s1170_s17  ;;  %s356_s8 = scalar_lea.vmem [#allocation11], %s1143_s24 }
  0x61   : > { %v1186_v8 = vunpack.c.h.bf16 %v1184_v5  ;;  %v1200_v10 = vld [vmem:[%s1724_s11 + $0x10] sm:$0xff]   ;;  %v450_v11 = vld [vmem:[#allocation8 + $0x70] sm:$0xff]  ;;  %453 = vmatpush.msra.mxu1 %v451_v7  ;;  %v1185_v12 = vunpack.c.l.bf16 %v1184_v5  ;;  %v449_v13 = vld [vmem:[#allocation8 + $0x68] sm:$0xff]  ;;  %v1744_v14 = vunpack.c.l.bf16 %v1172_v9  ;;  %v1752_v19 = vunpack.c.h.bf16 %v1172_v9  ;;  %s991_s7 = sshll.u32 %s356_s8, 4  ;;  %s993_s3 = sshll.u32 %s990_s10, 4  ;;  %s992_s7 = int_to_ptr.vmem [resolvable:$true] %s991_s7  ;;  %s994_s3 = int_to_ptr.hbm [resolvable:$true] %s993_s3 }
  0x62   : > { %411 = vmatpush.msra.mxu0 %v1194_v2  ;;  %1203 = vmatpush.msra.mxu3 %v1194_v2  ;;  %v1746_v15 = vunpack.c.l.bf16 %v1200_v10  ;;  %v448_v16 = vld [vmem:[#allocation8 + $0x60] sm:$0xff]  ;;  %v447_v17 = vld [vmem:[#allocation8 + $0x58] sm:$0xff]  ;;  %v446_v18 = vld [vmem:[#allocation8 + $0x50] sm:$0xff]  ;;  %v1754_v20 = vunpack.c.h.bf16 %v1200_v10  ;;  %s979_s23 = scalar_lea.sflag [#allocation4], %s1720_s1  ;;  %s1461_s27 = sshra.s32 %s994_s3, 4  ;;  %s1462_s27 = int_to_ptr.hbm [resolvable:$true] %s1461_s27 }
  0x63   : > { %454 = vmatpush.msra.mxu1 %v450_v11  ;;  %v445_v21 = vld [vmem:[#allocation8 + $0x48] sm:$0xff]  ;;  %v444_v22 = vld [vmem:[#allocation8 + $0x40] sm:$0xff]  ;;  %v443_v23 = vld [vmem:[#allocation8 + $0x38] sm:$0xff]  ;;  %s1463_s22 = scalar_lea.hbm %s1462_s27, 16  ;;  %s1467_s15 = scalar_lea.hbm %s1845_s5, 32 }
  0x64   : > { %412 = vmatpush.msra.mxu0 %v1193_v3  ;;  %1204 = vmatpush.msra.mxu3 %v1193_v3  ;;  %v1199_v24 = vld [vmem:[%s1724_s11 + $0x8] sm:$0xff]   ;;  %v441_v27 = vld [vmem:[#allocation8 + $0x28] sm:$0xff]  ;;  %v440_v28 = vld [vmem:[#allocation8 + $0x20] sm:$0xff]  ;;  %p1464_p4 = scmp.ne.s32.totalorder %s1462_s27, %s1463_s22  ;;  %p1468_p5 = scmp.lt.s32.totalorder %s1462_s27, %s1845_s5 }
  0x65   : > { %455 = vmatpush.msra.mxu1 %v449_v13  ;;  %v442_v25 = vld [vmem:[#allocation8 + $0x30] sm:$0xff]  ;;  %v1761_v26 = vunpack.c.l.bf16 %v1199_v24  ;;  %v439_v29 = vld [vmem:[#allocation8 + $0x18] sm:$0xff]  ;;  %v1765_v31 = vunpack.c.h.bf16 %v1199_v24  ;;  %v437_v32 = vld [vmem:[#allocation8 + $0x8] sm:$0xff]  ;;  %p1469_p1 = scmp.lt.s32.totalorder %s1467_s15, %s1463_s22 }
  0x66   : > { %413 = vmatpush.msra.mxu0 %v1190_v4  ;;  %1205 = vmatpush.msra.mxu3 %v1190_v4  ;;  %v438_v30 = vld [vmem:[#allocation8 + $0x10] sm:$0xff]  ;;  %v436_v33 = vld [vmem:[#allocation8] sm:$0xff]  ;;  %v510_v36 = vld [vmem:[#allocation8 + $0xf8] sm:$0xff]  ;;  %p1465_p12 = pnand %p1464_p4, %p1634_p7 }
  0x67   : > { %456 = vmatpush.msra.mxu1 %v448_v16  ;;  %v509_v37 = vld [vmem:[#allocation8 + $0xf0] sm:$0xff]  ;;  %512 = vmatpush.msra.mxu2 %v510_v36  ;;  %v508_v38 = vld [vmem:[#allocation8 + $0xe8] sm:$0xff]  ;;  %v507_v39 = vld [vmem:[#allocation8 + $0xe0] sm:$0xff]  ;;  %p1470_p10 = por %p1469_p1, %p1468_p5 }
  0x68   : > { %414 = vmatpush.msra.mxu0 %v1189_v6  ;;  %1206 = vmatpush.msra.mxu3 %v1189_v6  ;;  %v506_v40 = vld [vmem:[#allocation8 + $0xd8] sm:$0xff]  ;;  %v505_v42 = vld [vmem:[#allocation8 + $0xd0] sm:$0xff]  ;;  %v504_v43 = vld [vmem:[#allocation8 + $0xc8] sm:$0xff]  ;;  %p1466_p3 = pneg %p1465_p12 }
  0x69   : > { %457 = vmatpush.msra.mxu1 %v447_v17  ;;  %513 = vmatpush.msra.mxu2 %v509_v37  ;;  %v503_v44 = vld [vmem:[#allocation8 + $0xc0] sm:$0xff]  ;;  %v502_v45 = vld [vmem:[#allocation8 + $0xb8] sm:$0xff]  ;;  %v501_v47 = vld [vmem:[#allocation8 + $0xb0] sm:$0xff] }
  0x6a   : > { %415 = vmatpush.msra.mxu0 %v1186_v8  ;;  %1207 = vmatpush.msra.mxu3 %v1186_v8  ;;  %v500_v48 = vld [vmem:[#allocation8 + $0xa8] sm:$0xff]  ;;  %v499_v50 = vld [vmem:[#allocation8 + $0xa0] sm:$0xff]  ;;  %v498_v51 = vld [vmem:[#allocation8 + $0x98] sm:$0xff]  ;;  %p1471_p11 = pnand %p1470_p10, %p1466_p3 }
  0x6b   : > { %458 = vmatpush.msra.mxu1 %v446_v18  ;;  %514 = vmatpush.msra.mxu2 %v508_v38  ;;  %v497_v53 = vld [vmem:[#allocation8 + $0x90] sm:$0xff]  ;;  %v496_v54 = vld [vmem:[#allocation8 + $0x88] sm:$0xff]  ;;  %v495_v55 = vld [vmem:[#allocation8 + $0x80] sm:$0xff] }
  0x6c   : > { %416 = vmatpush.msra.mxu0 %v1185_v12  ;;  %1208 = vmatpush.msra.mxu3 %v1185_v12  ;;  %v1769_v56 = vld [vmem:[#allocation10] sm:$0xff]  ;;  %v604_v37 = vld [vmem:[#allocation8 + $0x178] sm:$0xff]  ;;  %v603_v38 = vld [vmem:[#allocation8 + $0x170] sm:$0xff] }
  0x6d   : > { %1144 = vmatmul.msk.f32.vlgmr.msra.gmra.mxu0 %vm382_vm0, %v1744_v14  ;;  %1148 = vmatmul.msk.f32.vlgmr.msra.gmra.mxu3 %vm382_vm0, %v1746_v15  ;;  %v452_v57 = vperm.slane %v1769_v56, 0 }
  0x6e   : > { %459 = vmatpush.msra.mxu1 %v445_v21  ;;  %515 = vmatpush.msra.mxu2 %v507_v39  ;;  %v511_v21 = vperm.slane %v1769_v56, 1  ;;  %v602_v39 = vld [vmem:[#allocation8 + $0x168] sm:$0xff] }
  0x6f   : > { %606 = vmatpush.msrb.mxu0 %v604_v37 }
  0x70   : > { %460 = vmatpush.msra.mxu1 %v444_v22  ;;  %516 = vmatpush.msra.mxu2 %v506_v40  ;;  %v601_v40 = vld [vmem:[#allocation8 + $0x160] sm:$0xff] }
  0x71   : > { %607 = vmatpush.msrb.mxu0 %v603_v38 }
  0x72   : > { %461 = vmatpush.msra.mxu1 %v443_v23  ;;  %517 = vmatpush.msra.mxu2 %v505_v42  ;;  %v599_v42 = vld [vmem:[#allocation8 + $0x150] sm:$0xff] }
  0x73   : > { %608 = vmatpush.msrb.mxu0 %v602_v39 }
  0x74   : > { %462 = vmatpush.msra.mxu1 %v442_v25  ;;  %518 = vmatpush.msra.mxu2 %v504_v43  ;;  %v598_v43 = vld [vmem:[#allocation8 + $0x148] sm:$0xff] }
  0x75   : > { %1145 = vmatmul.msk.f32.gmra.mxu0 %vm382_vm0, %v1752_v19  ;;  %1149 = vmatmul.msk.f32.gmra.mxu3 %vm382_vm0, %v1754_v20 }
  0x76   : > { %463 = vmatpush.msra.mxu1 %v441_v27  ;;  %519 = vmatpush.msra.mxu2 %v503_v44  ;;  %v597_v44 = vld [vmem:[#allocation8 + $0x140] sm:$0xff] }
  0x77   : > { %609 = vmatpush.msrb.mxu0 %v601_v40 }
  0x78   : > { %464 = vmatpush.msra.mxu1 %v440_v28  ;;  %520 = vmatpush.msra.mxu2 %v502_v45  ;;  %v596_v45 = vld [vmem:[#allocation8 + $0x138] sm:$0xff] }
  0x7a   : > { %465 = vmatpush.msra.mxu1 %v439_v29  ;;  %521 = vmatpush.msra.mxu2 %v501_v47  ;;  %v594_v47 = vld [vmem:[#allocation8 + $0x128] sm:$0xff] }
  0x7c   : > { %466 = vmatpush.msra.mxu1 %v438_v30  ;;  %522 = vmatpush.msra.mxu2 %v500_v48  ;;  %v593_v48 = vld [vmem:[#allocation8 + $0x120] sm:$0xff] }
  0x7d   : > { %1146 = vmatmul.msk.f32.gmra.mxu0 %vm382_vm0, %v1761_v26 }
  0x7e   : > { %467 = vmatpush.msra.mxu1 %v437_v32  ;;  %523 = vmatpush.msra.mxu2 %v499_v50  ;;  %v591_v50 = vld [vmem:[#allocation8 + $0x110] sm:$0xff] }
  0x80   : > { %468 = vmatpush.msra.mxu1 %v436_v33  ;;  %524 = vmatpush.msra.mxu2 %v498_v51  ;;  %v590_v51 = vld [vmem:[#allocation8 + $0x108] sm:$0xff] }
  0x82   : > { %525 = vmatpush.msra.mxu2 %v497_v53 }
  0x84   : > { %526 = vmatpush.msra.mxu2 %v496_v54 }
  0x85   : > { %1147 = vmatmul.msk.f32.gmra.mxu0 %vm382_vm0, %v1765_v31 }
  0x86   : > { %527 = vmatpush.msra.mxu2 %v495_v55  ;;  %v663_v55 = vld [vmem:[#allocation8 + $0x1f8] sm:$0xff] }
  0xea   : > { %v418_v34 = vpop.f32.mrf.mxu0 }
  0xeb   : > { %469 = vmatmul.f32.vlgmr.msra.gmra.mxu1 %v418_v34 }
  0xf0   : > { %v430_v49 = vpop.f32.mrf.mxu3 }
  0xf2   : > { %v421_v35 = vpop.f32.mrf.mxu0 }
  0xf3   : > { %472 = vmatmul.f32.gmra.mxu1 %v421_v35 }
  0xf8   : > { %v433_v52 = vpop.f32.mrf.mxu3 }
  0xfa   : > { %v424_v41 = vpop.f32.mrf.mxu0 }
  0xfb   : > { %475 = vmatmul.f32.gmra.mxu1 %v424_v41  ;;  %v600_v41 = vld [vmem:[#allocation8 + $0x158] sm:$0xff] }
  0xfc   : > { %610 = vmatpush.msrb.mxu0 %v600_v41 }
  0xfe   : > { %611 = vmatpush.msrb.mxu0 %v599_v42  ;;  %v664_v42 = vperm.slane %v1769_v56, 3 }
 0x100   : > { %612 = vmatpush.msrb.mxu0 %v598_v43 }
 0x102   : > { %v427_v46 = vpop.f32.mrf.mxu0  ;;  %613 = vmatpush.msrb.mxu0 %v597_v44 }
 0x103   : > { %478 = vmatmul.f32.gmra.mxu1 %v427_v46  ;;  %v595_v46 = vld [vmem:[#allocation8 + $0x130] sm:$0xff] }
 0x104   : > { %614 = vmatpush.msrb.mxu0 %v596_v45 }
 0x106   : > { %615 = vmatpush.msrb.mxu0 %v595_v46 }
 0x108   : > { %616 = vmatpush.msrb.mxu0 %v594_v47 }
 0x10a   : > { %617 = vmatpush.msrb.mxu0 %v593_v48 }
 0x10b   : > { %481 = vmatmul.f32.gmra.mxu1 %v430_v49  ;;  %v592_v49 = vld [vmem:[#allocation8 + $0x118] sm:$0xff] }
 0x10c   : > { %618 = vmatpush.msrb.mxu0 %v592_v49 }
 0x10e   : > { %619 = vmatpush.msrb.mxu0 %v591_v50 }
 0x110   : > { %620 = vmatpush.msrb.mxu0 %v590_v51 }
 0x113   : > { %484 = vmatmul.f32.gmra.mxu1 %v433_v52  ;;  %v589_v52 = vld [vmem:[#allocation8 + $0x100] sm:$0xff] }
 0x114   : > { %621 = vmatpush.msrb.mxu0 %v589_v52 }
 0x168   : > { %v470_v58 = vpop.f32.mrf.mxu1 }
 0x169   : > { %v471_v59 = vadd.f32 %v470_v58, %v452_v57  ;;  %v661_v58 = vld [vmem:[#allocation8 + $0x1e8] sm:$0xff] }
 0x16b   : > { %v488_v60 = vmax.f32 %v471_v59, 0.0  ;;  %v660_v59 = vld [vmem:[#allocation8 + $0x1e0] sm:$0xff] }
 0x16d   : > { %528 = vmatmul.f32.vlgmr.msra.gmra.mxu2 %v488_v60  ;;  %v659_v60 = vld [vmem:[#allocation8 + $0x1d8] sm:$0xff] }
 0x170   : > { %v473_v61 = vpop.f32.mrf.mxu1 }
 0x171   : > { %v474_v62 = vadd.f32 %v473_v61, %v452_v57 }
 0x173   : > { %v489_v63 = vmax.f32 %v474_v62, 0.0  ;;  %v658_v62 = vld [vmem:[#allocation8 + $0x1d0] sm:$0xff] }
 0x175   : > { %531 = vmatmul.f32.gmra.mxu2 %v489_v63  ;;  %v657_v63 = vld [vmem:[#allocation8 + $0x1c8] sm:$0xff] }
 0x178   : > { %v476_v0 = vpop.f32.mrf.mxu1 }
 0x179   : > { %v477_v1 = vadd.f32 %v476_v0, %v452_v57  ;;  %v656_v0 = vld [vmem:[#allocation8 + $0x1c0] sm:$0xff] }
 0x17b   : > { %v490_v2 = vmax.f32 %v477_v1, 0.0  ;;  %v655_v1 = vld [vmem:[#allocation8 + $0x1b8] sm:$0xff] }
 0x17d   : > { %534 = vmatmul.f32.gmra.mxu2 %v490_v2 }
 0x180   : > { %v479_v3 = vpop.f32.mrf.mxu1 }
 0x181   : > { %v480_v4 = vadd.f32 %v479_v3, %v452_v57  ;;  %v654_v3 = vld [vmem:[#allocation8 + $0x1b0] sm:$0xff] }
 0x183   : > { %v491_v5 = vmax.f32 %v480_v4, 0.0  ;;  %v653_v4 = vld [vmem:[#allocation8 + $0x1a8] sm:$0xff] }
 0x185   : > { %537 = vmatmul.f32.gmra.mxu2 %v491_v5  ;;  %v652_v5 = vld [vmem:[#allocation8 + $0x1a0] sm:$0xff] }
 0x188   : > { %v482_v6 = vpop.f32.mrf.mxu1 }
 0x189   : > { %v483_v7 = vadd.f32 %v482_v6, %v452_v57  ;;  %v651_v6 = vld [vmem:[#allocation8 + $0x198] sm:$0xff] }
 0x18b   : > { %v492_v8 = vmax.f32 %v483_v7, 0.0 }
 0x18d   : > { %540 = vmatmul.f32.gmra.mxu2 %v492_v8 }
 0x190   : > { %v485_v9 = vpop.f32.mrf.mxu1 }
 0x191   : > { %v486_v10 = vadd.f32 %v485_v9, %v452_v57  ;;  %v662_v57 = vld [vmem:[#allocation8 + $0x1f0] sm:$0xff] }
 0x192   : > { %v650_v9 = vld [vmem:[#allocation8 + $0x190] sm:$0xff] }
 0x193   : > { %v493_v11 = vmax.f32 %v486_v10, 0.0  ;;  %v649_v10 = vld [vmem:[#allocation8 + $0x188] sm:$0xff] }
 0x195   : > { %543 = vmatmul.f32.gmra.mxu2 %v493_v11  ;;  %v648_v11 = vld [vmem:[#allocation8 + $0x180] sm:$0xff] }
 0x1f0   : > { %v529_v12 = vpop.f32.mrf.mxu2 }
 0x1f1   : > { %v530_v33 = vadd.f32 %v529_v12, %v511_v21  ;;  %v605_v12 = vperm.slane %v1769_v56, 2 }
 0x1f3   : > { %v547_v36 = vmax.f32 %v530_v33, 0.0 }
 0x1f8   : > { %v532_v13 = vpop.f32.mrf.mxu2 }
 0x1f9   : > { %v533_v30 = vadd.f32 %v532_v13, %v511_v21 }
 0x1fb   : > { %v548_v35 = vmax.f32 %v533_v30, 0.0 }
 0x200   : > { %v535_v16 = vpop.f32.mrf.mxu2 }
 0x201   : > { %v536_v28 = vadd.f32 %v535_v16, %v511_v21 }
 0x203   : > { %v549_v34 = vmax.f32 %v536_v28, 0.0 }
 0x208   : > { %v538_v17 = vpop.f32.mrf.mxu2 }
 0x209   : > { %v539_v25 = vadd.f32 %v538_v17, %v511_v21 }
 0x20b   : > { %v550_v32 = vmax.f32 %v539_v25, 0.0 }
 0x210   : > { %v541_v18 = vpop.f32.mrf.mxu2 }
 0x211   : > { %v542_v23 = vadd.f32 %v541_v18, %v511_v21 }
 0x213   : > { %v551_v29 = vmax.f32 %v542_v23, 0.0 }
 0x218   : > { %v544_v22 = vpop.f32.mrf.mxu2 }
 0x219   : > { %v545_v24 = vadd.f32 %v544_v22, %v511_v21 }
 0x21b   : > { %v552_v27 = vmax.f32 %v545_v24, 0.0 }
 0x21d   : > { %563 = vmatpush.msrb.mxu3 %v552_v27 }
 0x21f   : > { %564 = vmatpush.msrb.mxu3 %v551_v29 }
 0x221   : > { %565 = vmatpush.msrb.mxu3 %v550_v32 }
 0x223   : > { %566 = vmatpush.msrb.mxu3 %v549_v34 }
 0x225   : > { %567 = vmatpush.msrb.mxu3 %v548_v35 }
 0x227   : > { %568 = vmatpush.msrb.mxu3 %v547_v36 }
 0x228   : > { %1150 = vmatmul.msk.f32.vlgmr.msrb.gmra.mxu3 %vm382_vm0, %v1744_v14 }
 0x229   : > { %665 = vmatpush.msra.mxu3 %v663_v55 }
 0x22b   : > { %666 = vmatpush.msra.mxu3 %v662_v57  ;;  %v757_v57 = vld [vmem:[#allocation8 + $0x278] sm:$0xff] }
 0x22c   : > { %759 = vmatpush.msrb.mxu2 %v757_v57  ;;  %v907_v57 = vld [vmem:[#allocation8 + $0x370] sm:$0xff] }
 0x22d   : > { %667 = vmatpush.msra.mxu3 %v661_v58  ;;  %v756_v58 = vld [vmem:[#allocation8 + $0x270] sm:$0xff] }
 0x22e   : > { %760 = vmatpush.msrb.mxu2 %v756_v58  ;;  %v906_v58 = vld [vmem:[#allocation8 + $0x368] sm:$0xff] }
 0x22f   : > { %668 = vmatpush.msra.mxu3 %v660_v59  ;;  %v755_v59 = vld [vmem:[#allocation8 + $0x268] sm:$0xff] }
 0x230   : > { %1151 = vmatmul.msk.f32.gmra.mxu3 %vm382_vm0, %v1752_v19  ;;  %761 = vmatpush.msrb.mxu2 %v755_v59  ;;  %v905_v59 = vld [vmem:[#allocation8 + $0x360] sm:$0xff] }
 0x231   : > { %669 = vmatpush.msra.mxu3 %v659_v60  ;;  %v754_v60 = vld [vmem:[#allocation8 + $0x260] sm:$0xff] }
 0x232   : > { %762 = vmatpush.msrb.mxu2 %v754_v60  ;;  %v904_v60 = vld [vmem:[#allocation8 + $0x358] sm:$0xff] }
 0x233   : > { %670 = vmatpush.msra.mxu3 %v658_v62  ;;  %v752_v62 = vld [vmem:[#allocation8 + $0x250] sm:$0xff] }
 0x235   : > { %671 = vmatpush.msra.mxu3 %v657_v63  ;;  %v751_v63 = vld [vmem:[#allocation8 + $0x248] sm:$0xff] }
 0x237   : > { %672 = vmatpush.msra.mxu3 %v656_v0  ;;  %v749_v0 = vld [vmem:[#allocation8 + $0x238] sm:$0xff] }
 0x238   : > { %1152 = vmatmul.msk.f32.gmra.mxu3 %vm382_vm0, %v1761_v26 }
 0x239   : > { %673 = vmatpush.msra.mxu3 %v655_v1  ;;  %v747_v1 = vld [vmem:[#allocation8 + $0x228] sm:$0xff] }
 0x23b   : > { %674 = vmatpush.msra.mxu3 %v654_v3  ;;  %v745_v3 = vld [vmem:[#allocation8 + $0x218] sm:$0xff] }
 0x23d   : > { %675 = vmatpush.msra.mxu3 %v653_v4  ;;  %v743_v4 = vld [vmem:[#allocation8 + $0x208] sm:$0xff] }
 0x23f   : > { %676 = vmatpush.msra.mxu3 %v652_v5 }
 0x240   : > { %1153 = vmatmul.msk.f32.gmra.mxu3 %vm382_vm0, %v1765_v31 }
 0x241   : > { %677 = vmatpush.msra.mxu3 %v651_v6 }
 0x243   : > { %678 = vmatpush.msra.mxu3 %v650_v9  ;;  %v814_v9 = vld [vmem:[#allocation8 + $0x2e8] sm:$0xff] }
 0x245   : > { %679 = vmatpush.msra.mxu3 %v649_v10  ;;  %v812_v10 = vld [vmem:[#allocation8 + $0x2d8] sm:$0xff] }
 0x247   : > { %680 = vmatpush.msra.mxu3 %v648_v11 }
 0x248   : > { %1154 = vmatmul.msk.f32.gmra.mxu3 %vm382_vm0, %v1746_v15 }
 0x250   : > { %1155 = vmatmul.msk.f32.gmra.mxu3 %vm382_vm0, %v1754_v20 }
 0x2ab   : > { %v570_v53 = vpop.f32.mrf.mxu3 }
 0x2ac   : > { %622 = vmatmul.f32.vlgmr.msrb.gmra.mxu0 %v570_v53 }
 0x2b3   : > { %v573_v54 = vpop.f32.mrf.mxu3 }
 0x2b4   : > { %625 = vmatmul.f32.gmra.mxu0 %v573_v54 }
 0x2bb   : > { %v576_v61 = vpop.f32.mrf.mxu3 }
 0x2bc   : > { %628 = vmatmul.f32.gmra.mxu0 %v576_v61  ;;  %v753_v61 = vld [vmem:[#allocation8 + $0x258] sm:$0xff] }
 0x2bd   : > { %763 = vmatpush.msrb.mxu2 %v753_v61  ;;  %v817_v61 = vperm.slane %v1769_v56, 5 }
 0x2bf   : > { %764 = vmatpush.msrb.mxu2 %v752_v62 }
 0x2c1   : > { %765 = vmatpush.msrb.mxu2 %v751_v63  ;;  %v903_v63 = vld [vmem:[#allocation8 + $0x350] sm:$0xff] }
 0x2c3   : > { %v579_v2 = vpop.f32.mrf.mxu3 }
 0x2c4   : > { %631 = vmatmul.f32.gmra.mxu0 %v579_v2  ;;  %v746_v2 = vld [vmem:[#allocation8 + $0x220] sm:$0xff] }
 0x2cb   : > { %v582_v7 = vpop.f32.mrf.mxu3 }
 0x2cc   : > { %634 = vmatmul.f32.gmra.mxu0 %v582_v7  ;;  %v816_v7 = vld [vmem:[#allocation8 + $0x2f8] sm:$0xff] }
 0x2cd   : > { %818 = vmatpush.msra.mxu0 %v816_v7  ;;  %v899_v7 = vld [vmem:[#allocation8 + $0x330] sm:$0xff] }
 0x2d3   : > { %v585_v8 = vpop.f32.mrf.mxu3 }
 0x2d4   : > { %637 = vmatmul.f32.gmra.mxu0 %v585_v8  ;;  %v815_v8 = vld [vmem:[#allocation8 + $0x2f0] sm:$0xff] }
 0x2d5   : > { %819 = vmatpush.msra.mxu0 %v815_v8 }
 0x2d7   : > { %820 = vmatpush.msra.mxu0 %v814_v9 }
 0x329   : > { %v623_v13 = vpop.f32.mrf.mxu0 }
 0x32a   : > { %v624_v16 = vadd.f32 %v623_v13, %v605_v12  ;;  %v809_v13 = vld [vmem:[#allocation8 + $0x2c0] sm:$0xff] }
 0x32c   : > { %v641_v17 = vmax.f32 %v624_v16, 0.0  ;;  %v808_v16 = vld [vmem:[#allocation8 + $0x2b8] sm:$0xff] }
 0x32e   : > { %681 = vmatmul.f32.vlgmr.msra.gmra.mxu3 %v641_v17 }
 0x331   : > { %v626_v18 = vpop.f32.mrf.mxu0 }
 0x332   : > { %v627_v21 = vadd.f32 %v626_v18, %v605_v12  ;;  %v807_v18 = vld [vmem:[#allocation8 + $0x2b0] sm:$0xff] }
 0x334   : > { %v642_v22 = vmax.f32 %v627_v21, 0.0  ;;  %v806_v21 = vld [vmem:[#allocation8 + $0x2a8] sm:$0xff] }
 0x336   : > { %684 = vmatmul.f32.gmra.mxu3 %v642_v22  ;;  %v805_v22 = vld [vmem:[#allocation8 + $0x2a0] sm:$0xff] }
 0x339   : > { %v629_v23 = vpop.f32.mrf.mxu0 }
 0x33a   : > { %v630_v24 = vadd.f32 %v629_v23, %v605_v12  ;;  %v804_v23 = vld [vmem:[#allocation8 + $0x298] sm:$0xff] }
 0x33c   : > { %v643_v25 = vmax.f32 %v630_v24, 0.0 }
 0x33e   : > { %687 = vmatmul.f32.gmra.mxu3 %v643_v25 }
 0x341   : > { %v632_v27 = vpop.f32.mrf.mxu0 }
 0x342   : > { %v633_v28 = vadd.f32 %v632_v27, %v605_v12  ;;  %v803_v27 = vld [vmem:[#allocation8 + $0x290] sm:$0xff] }
 0x344   : > { %v644_v29 = vmax.f32 %v633_v28, 0.0  ;;  %v802_v28 = vld [vmem:[#allocation8 + $0x288] sm:$0xff] }
 0x346   : > { %690 = vmatmul.f32.gmra.mxu3 %v644_v29  ;;  %v801_v29 = vld [vmem:[#allocation8 + $0x280] sm:$0xff] }
 0x349   : > { %v635_v30 = vpop.f32.mrf.mxu0 }
 0x34a   : > { %v636_v32 = vadd.f32 %v635_v30, %v605_v12  ;;  %v758_v30 = vperm.slane %v1769_v56, 4 }
 0x34c   : > { %v645_v33 = vmax.f32 %v636_v32, 0.0 }
 0x34e   : > { %693 = vmatmul.f32.gmra.mxu3 %v645_v33 }
 0x351   : > { %v638_v34 = vpop.f32.mrf.mxu0 }
 0x352   : > { %v639_v35 = vadd.f32 %v638_v34, %v605_v12  ;;  %v811_v12 = vld [vmem:[#allocation8 + $0x2d0] sm:$0xff] }
 0x354   : > { %v646_v36 = vmax.f32 %v639_v35, 0.0 }
 0x356   : > { %696 = vmatmul.f32.gmra.mxu3 %v646_v36 }
 0x3b1   : > { %v682_v37 = vpop.f32.mrf.mxu3 }
 0x3b2   : > { %v683_v52 = vadd.f32 %v682_v37, %v664_v42 }
 0x3b4   : > { %v700_v55 = vmax.f32 %v683_v52, 0.0 }
 0x3b9   : > { %v685_v38 = vpop.f32.mrf.mxu3 }
 0x3ba   : > { %v686_v50 = vadd.f32 %v685_v38, %v664_v42 }
 0x3bc   : > { %v701_v54 = vmax.f32 %v686_v50, 0.0 }
 0x3c1   : > { %v688_v39 = vpop.f32.mrf.mxu3 }
 0x3c2   : > { %v689_v48 = vadd.f32 %v688_v39, %v664_v42 }
 0x3c4   : > { %v702_v53 = vmax.f32 %v689_v48, 0.0 }
 0x3c9   : > { %v691_v40 = vpop.f32.mrf.mxu3 }
 0x3ca   : > { %v692_v46 = vadd.f32 %v691_v40, %v664_v42 }
 0x3cc   : > { %v703_v51 = vmax.f32 %v692_v46, 0.0 }
 0x3d1   : > { %v694_v41 = vpop.f32.mrf.mxu3 }
 0x3d2   : > { %v695_v44 = vadd.f32 %v694_v41, %v664_v42 }
 0x3d4   : > { %v704_v49 = vmax.f32 %v695_v44, 0.0 }
 0x3d9   : > { %v697_v43 = vpop.f32.mrf.mxu3 }
 0x3da   : > { %v698_v45 = vadd.f32 %v697_v43, %v664_v42 }
 0x3dc   : > { %v705_v47 = vmax.f32 %v698_v45, 0.0 }
 0x3de   : > { %716 = vmatpush.msrb.mxu1 %v705_v47 }
 0x3e0   : > { %717 = vmatpush.msrb.mxu1 %v704_v49 }
 0x3e2   : > { %718 = vmatpush.msrb.mxu1 %v703_v51 }
 0x3e4   : > { %719 = vmatpush.msrb.mxu1 %v702_v53 }
 0x3e6   : > { %720 = vmatpush.msrb.mxu1 %v701_v54 }
 0x3e8   : > { %721 = vmatpush.msrb.mxu1 %v700_v55  ;;  %v908_v55 = vld [vmem:[#allocation8 + $0x378] sm:$0xff] }
 0x3e9   : > { %1156 = vmatmul.msk.f32.vlgmr.msrb.gmra.mxu1 %vm382_vm0, %v1744_v14  ;;  %v750_v14 = vld [vmem:[#allocation8 + $0x240] sm:$0xff] }
 0x3ea   : > { %766 = vmatpush.msrb.mxu2 %v750_v14  ;;  %910 = vmatpush.msra.mxu1 %v908_v55 }
 0x3ec   : > { %767 = vmatpush.msrb.mxu2 %v749_v0  ;;  %911 = vmatpush.msra.mxu1 %v907_v57 }
 0x3ee   : > { %912 = vmatpush.msra.mxu1 %v906_v58 }
 0x3f0   : > { %913 = vmatpush.msra.mxu1 %v905_v59 }
 0x3f1   : > { %1157 = vmatmul.msk.f32.gmra.mxu1 %vm382_vm0, %v1752_v19  ;;  %v748_v19 = vld [vmem:[#allocation8 + $0x230] sm:$0xff] }
 0x3f2   : > { %768 = vmatpush.msrb.mxu2 %v748_v19  ;;  %914 = vmatpush.msra.mxu1 %v904_v60  ;;  %v902_v19 = vld [vmem:[#allocation8 + $0x348] sm:$0xff] }
 0x3f4   : > { %769 = vmatpush.msrb.mxu2 %v747_v1  ;;  %915 = vmatpush.msra.mxu1 %v903_v63 }
 0x3f6   : > { %770 = vmatpush.msrb.mxu2 %v746_v2  ;;  %916 = vmatpush.msra.mxu1 %v902_v19 }
 0x3f8   : > { %771 = vmatpush.msrb.mxu2 %v745_v3  ;;  %v901_v3 = vld [vmem:[#allocation8 + $0x340] sm:$0xff] }
 0x3f9   : > { %1158 = vmatmul.msk.f32.gmra.mxu1 %vm382_vm0, %v1761_v26  ;;  %v744_v26 = vld [vmem:[#allocation8 + $0x210] sm:$0xff] }
 0x3fa   : > { %772 = vmatpush.msrb.mxu2 %v744_v26  ;;  %917 = vmatpush.msra.mxu1 %v901_v3 }
 0x3fc   : > { %773 = vmatpush.msrb.mxu2 %v743_v4 }
 0x401   : > { %1159 = vmatmul.msk.f32.gmra.mxu1 %vm382_vm0, %v1765_v31  ;;  %v742_v31 = vld [vmem:[#allocation8 + $0x200] sm:$0xff] }
 0x402   : > { %774 = vmatpush.msrb.mxu2 %v742_v31  ;;  %v900_v31 = vld [vmem:[#allocation8 + $0x338] sm:$0xff] }
 0x403   : > { %918 = vmatpush.msra.mxu1 %v900_v31 }
 0x405   : > { %919 = vmatpush.msra.mxu1 %v899_v7 }
 0x409   : > { %1160 = vmatmul.msk.f32.gmra.mxu1 %vm382_vm0, %v1746_v15  ;;  %v813_v15 = vld [vmem:[#allocation8 + $0x2e0] sm:$0xff] }
 0x40a   : > { %821 = vmatpush.msra.mxu0 %v813_v15  ;;  %v1196_v15 = vld [vmem:[%s1732_s26] sm:$0xff]  }
 0x40c   : > { %822 = vmatpush.msra.mxu0 %v812_v10  ;;  %v898_v10 = vld [vmem:[#allocation8 + $0x328] sm:$0xff] }
 0x40d   : > { %920 = vmatpush.msra.mxu1 %v898_v10 }
 0x40e   : > { %823 = vmatpush.msra.mxu0 %v811_v12  ;;  %v1197_v12 = vunpack.c.l.bf16 %v1196_v15 }
 0x411   : > { %1161 = vmatmul.msk.f32.gmra.mxu1 %vm382_vm0, %v1754_v20  ;;  %v810_v20 = vld [vmem:[#allocation8 + $0x2c8] sm:$0xff] }
 0x412   : > { %824 = vmatpush.msra.mxu0 %v810_v20  ;;  %v897_v20 = vld [vmem:[#allocation8 + $0x320] sm:$0xff] }
 0x413   : > { %921 = vmatpush.msra.mxu1 %v897_v20 }
 0x414   : > { %825 = vmatpush.msra.mxu0 %v809_v13 }
 0x416   : > { %826 = vmatpush.msra.mxu0 %v808_v16  ;;  %v896_v16 = vld [vmem:[#allocation8 + $0x318] sm:$0xff] }
 0x417   : > { %922 = vmatpush.msra.mxu1 %v896_v16 }
 0x418   : > { %827 = vmatpush.msra.mxu0 %v807_v18  ;;  %v894_v18 = vld [vmem:[#allocation8 + $0x308] sm:$0xff] }
 0x41a   : > { %828 = vmatpush.msra.mxu0 %v806_v21  ;;  %v1198_v21 = vunpack.c.h.bf16 %v1196_v15 }
 0x41c   : > { %829 = vmatpush.msra.mxu0 %v805_v22  ;;  %v893_v22 = vld [vmem:[#allocation8 + $0x300] sm:$0xff] }
 0x41e   : > { %830 = vmatpush.msra.mxu0 %v804_v23  ;;  %v951_v23 = vld [vmem:[#allocation8 + $0x3f8] sm:$0xff] }
 0x41f   : > { %953 = vmatpush.msra.mxu2 %v951_v23 }
 0x420   : > { %831 = vmatpush.msra.mxu0 %v803_v27  ;;  %v948_v27 = vld [vmem:[#allocation8 + $0x3e0] sm:$0xff] }
 0x422   : > { %832 = vmatpush.msra.mxu0 %v802_v28  ;;  %v947_v28 = vld [vmem:[#allocation8 + $0x3d8] sm:$0xff] }
 0x424   : > { %833 = vmatpush.msra.mxu0 %v801_v29  ;;  %v946_v29 = vld [vmem:[#allocation8 + $0x3d0] sm:$0xff] }
 0x466   : > { %v723_v5 = vpop.f32.mrf.mxu1 }
 0x467   : > { %775 = vmatmul.f32.vlgmr.msrb.gmra.mxu2 %v723_v5 }
 0x46e   : > { %v726_v6 = vpop.f32.mrf.mxu1 }
 0x46f   : > { %778 = vmatmul.f32.gmra.mxu2 %v726_v6 }
 0x476   : > { %v729_v11 = vpop.f32.mrf.mxu1 }
 0x477   : > { %781 = vmatmul.f32.gmra.mxu2 %v729_v11 }
 0x47e   : > { %v732_v17 = vpop.f32.mrf.mxu1 }
 0x47f   : > { %784 = vmatmul.f32.gmra.mxu2 %v732_v17  ;;  %v895_v17 = vld [vmem:[#allocation8 + $0x310] sm:$0xff] }
 0x480   : > { %923 = vmatpush.msra.mxu1 %v895_v17 }
 0x482   : > { %924 = vmatpush.msra.mxu1 %v894_v18 }
 0x484   : > { %925 = vmatpush.msra.mxu1 %v893_v22 }
 0x486   : > { %v735_v24 = vpop.f32.mrf.mxu1 }
 0x487   : > { %787 = vmatmul.f32.gmra.mxu2 %v735_v24  ;;  %v950_v24 = vld [vmem:[#allocation8 + $0x3f0] sm:$0xff] }
 0x488   : > { %954 = vmatpush.msra.mxu2 %v950_v24 }
 0x48e   : > { %v738_v25 = vpop.f32.mrf.mxu1 }
 0x48f   : > { %790 = vmatmul.f32.gmra.mxu2 %v738_v25  ;;  %v949_v25 = vld [vmem:[#allocation8 + $0x3e8] sm:$0xff] }
 0x490   : > { %955 = vmatpush.msra.mxu2 %v949_v25 }
 0x492   : > { %956 = vmatpush.msra.mxu2 %v948_v27 }
 0x494   : > { %957 = vmatpush.msra.mxu2 %v947_v28 }
 0x496   : > { %958 = vmatpush.msra.mxu2 %v946_v29 }
 0x4ea   : > { %v776_v32 = vpop.f32.mrf.mxu2 }
 0x4eb   : > { %v777_v33 = vadd.f32 %v776_v32, %v758_v30  ;;  %v944_v32 = vld [vmem:[#allocation8 + $0x3c0] sm:$0xff] }
 0x4ed   : > { %v794_v34 = vmax.f32 %v777_v33, 0.0  ;;  %v943_v33 = vld [vmem:[#allocation8 + $0x3b8] sm:$0xff] }
 0x4ef   : > { %834 = vmatmul.f32.vlgmr.msra.gmra.mxu0 %v794_v34  ;;  %v942_v34 = vld [vmem:[#allocation8 + $0x3b0] sm:$0xff] }
 0x4f2   : > { %v779_v35 = vpop.f32.mrf.mxu2 }
 0x4f3   : > { %v780_v36 = vadd.f32 %v779_v35, %v758_v30  ;;  %v941_v35 = vld [vmem:[#allocation8 + $0x3a8] sm:$0xff] }
 0x4f5   : > { %v795_v37 = vmax.f32 %v780_v36, 0.0  ;;  %v940_v36 = vld [vmem:[#allocation8 + $0x3a0] sm:$0xff] }
 0x4f7   : > { %837 = vmatmul.f32.gmra.mxu0 %v795_v37  ;;  %v939_v37 = vld [vmem:[#allocation8 + $0x398] sm:$0xff] }
 0x4fa   : > { %v782_v38 = vpop.f32.mrf.mxu2 }
 0x4fb   : > { %v783_v39 = vadd.f32 %v782_v38, %v758_v30 }
 0x4fd   : > { %v796_v40 = vmax.f32 %v783_v39, 0.0  ;;  %v938_v39 = vld [vmem:[#allocation8 + $0x390] sm:$0xff] }
 0x4ff   : > { %840 = vmatmul.f32.gmra.mxu0 %v796_v40  ;;  %v937_v40 = vld [vmem:[#allocation8 + $0x388] sm:$0xff] }
 0x502   : > { %v785_v41 = vpop.f32.mrf.mxu2 }
 0x503   : > { %v786_v42 = vadd.f32 %v785_v41, %v758_v30 }
 0x505   : > { %v797_v43 = vmax.f32 %v786_v42, 0.0  ;;  %v936_v42 = vld [vmem:[#allocation8 + $0x380] sm:$0xff] }
 0x507   : > { %843 = vmatmul.f32.gmra.mxu0 %v797_v43  ;;  %v909_v43 = vperm.slane %v1769_v56, 6 }
 0x50a   : > { %v788_v44 = vpop.f32.mrf.mxu2 }
 0x50b   : > { %v789_v45 = vadd.f32 %v788_v44, %v758_v30 }
 0x50d   : > { %v798_v46 = vmax.f32 %v789_v45, 0.0 }
 0x50f   : > { %846 = vmatmul.f32.gmra.mxu0 %v798_v46 }
 0x512   : > { %v791_v47 = vpop.f32.mrf.mxu2 }
 0x513   : > { %v792_v48 = vadd.f32 %v791_v47, %v758_v30  ;;  %v945_v30 = vld [vmem:[#allocation8 + $0x3c8] sm:$0xff] }
 0x514   : > { %959 = vmatpush.msra.mxu2 %v945_v30 }
 0x515   : > { %v799_v49 = vmax.f32 %v792_v48, 0.0 }
 0x516   : > { %960 = vmatpush.msra.mxu2 %v944_v32 }
 0x517   : > { %849 = vmatmul.f32.gmra.mxu0 %v799_v49 }
 0x518   : > { %961 = vmatpush.msra.mxu2 %v943_v33 }
 0x51a   : > { %962 = vmatpush.msra.mxu2 %v942_v34 }
 0x51c   : > { %963 = vmatpush.msra.mxu2 %v941_v35 }
 0x51e   : > { %964 = vmatpush.msra.mxu2 %v940_v36 }
 0x520   : > { %965 = vmatpush.msra.mxu2 %v939_v37 }
 0x522   : > { %966 = vmatpush.msra.mxu2 %v938_v39 }
 0x524   : > { %967 = vmatpush.msra.mxu2 %v937_v40 }
 0x526   : > { %968 = vmatpush.msra.mxu2 %v936_v42 }
 0x56c   : > { %v835_v50 = vpop.f32.mrf.mxu0 }
 0x56d   : > { %v836_v8 = vadd.f32 %v835_v50, %v817_v61  ;;  %v952_v50 = vperm.slane %v1769_v56, 7 }
 0x56f   : > { %v853_v13 = vmax.f32 %v836_v8, 0.0 }
 0x574   : > { %v838_v51 = vpop.f32.mrf.mxu0 }
 0x575   : > { %v839_v5 = vadd.f32 %v838_v51, %v817_v61 }
 0x577   : > { %v854_v11 = vmax.f32 %v839_v5, 0.0 }
 0x57c   : > { %v841_v52 = vpop.f32.mrf.mxu0 }
 0x57d   : > { %v842_v26 = vadd.f32 %v841_v52, %v817_v61 }
 0x57f   : > { %v855_v9 = vmax.f32 %v842_v26, 0.0 }
 0x584   : > { %v844_v53 = vpop.f32.mrf.mxu0 }
 0x585   : > { %v845_v1 = vadd.f32 %v844_v53, %v817_v61 }
 0x587   : > { %v856_v6 = vmax.f32 %v845_v1, 0.0 }
 0x58c   : > { %v847_v54 = vpop.f32.mrf.mxu0 }
 0x58d   : > { %v848_v14 = vadd.f32 %v847_v54, %v817_v61 }
 0x58f   : > { %v857_v4 = vmax.f32 %v848_v14, 0.0 }
 0x594   : > { %v850_v62 = vpop.f32.mrf.mxu0 }
 0x595   : > { %v851_v0 = vadd.f32 %v850_v62, %v817_v61 }
 0x597   : > { %v858_v2 = vmax.f32 %v851_v0, 0.0 }
 0x599   : > { %879 = vmatpush.msrb.mxu3 %v858_v2 }
 0x59b   : > { %880 = vmatpush.msrb.mxu3 %v857_v4 }
 0x59d   : > { %881 = vmatpush.msrb.mxu3 %v856_v6 }
 0x59f   : > { %882 = vmatpush.msrb.mxu3 %v855_v9 }
 0x5a1   : > { %883 = vmatpush.msrb.mxu3 %v854_v11 }
 0x5a3   : > { %884 = vmatpush.msrb.mxu3 %v853_v13 }
 0x5a4   : > { %1162 = vmatmul.msk.f32.vlgmr.msrb.gmra.mxu3 %vm382_vm0, %v1197_v12 }
 0x5ac   : > { %1163 = vmatmul.msk.f32.gmra.mxu3 %vm382_vm0, %v1198_v21 }
 0x627   : > { %v886_v38 = vpop.f32.mrf.mxu3 }
 0x628   : > { %926 = vmatmul.f32.vlgmr.msra.gmra.mxu1 %v886_v38 }
 0x62f   : > { %v889_v41 = vpop.f32.mrf.mxu3 }
 0x630   : > { %929 = vmatmul.f32.gmra.mxu1 %v889_v41 }
 0x6a5   : > { %v927_v44 = vpop.f32.mrf.mxu1 }
 0x6a6   : > { %v928_v45 = vadd.f32 %v927_v44, %v909_v43 }
 0x6a8   : > { %v933_v46 = vmax.f32 %v928_v45, 0.0 }
 0x6aa   : > { %969 = vmatmul.f32.vlgmr.msra.gmra.mxu2 %v933_v46 }
 0x6ad   : > { %v930_v47 = vpop.f32.mrf.mxu1 }
 0x6ae   : > { %v931_v48 = vadd.f32 %v930_v47, %v909_v43 }
 0x6b0   : > { %v934_v49 = vmax.f32 %v931_v48, 0.0 }
 0x6b2   : > { %972 = vmatmul.f32.gmra.mxu2 %v934_v49 }
 0x72d   : > { %v970_v51 = vpop.f32.mrf.mxu2 }
 0x72e   : > { %v971_v52 = vadd.f32 %v970_v51, %v952_v50 }
 0x730   : > { %976 = vst [vmem:[%s356_s8] sm:$0xff] %v971_v52 }
 0x735   : > { %v973_v53 = vpop.f32.mrf.mxu2 }
 0x736   : > { %v974_v54 = vadd.f32 %v973_v53, %v952_v50 }
 0x738   : > { %977 = vst [vmem:[%s356_s8 + $0x8] sm:$0xff] %v974_v54 }
 0x739   : > { %1474 = shalt.err (!%p1471_p11)
}
 0x73a   : > { %s1529_s1 = smov 128   ;;  %s1530_s29 = smov 8  }
 0x73b   : > { %1228 = dma.vmem_to_hbm [thread:$0]  (%p1634_p7), %s992_s7, 256, %s994_s3, %s979_s23, %s1529_s1, %s1529_s1, %s1530_s29  }
 0x73c PF: > { %s1008_s13 = sand.u32 1, %s1509_s18   ;;  %p1871_p2 = scmp.ge.s32.totalorder %s1521_s21, 2 }
 0x73d   : > { %s1009_s16 = scalar_lea.sflag [#allocation4], %s1008_s13 }
 0x73e   : > { %p1248_p13 = pnand %p1871_p2, %p1596_p6 }
 0x740   : > { %p1249_p0 = pneg %p1248_p13 }
 0x742   : > { %1504 = dma.done.wait (%p1249_p0), %s1009_s16, 256  }
 0x743   : > { %1506 = vsyncadd (%p1249_p0), %s1009_s16, 4294967040  ;;  %s1872_s21 = sld [smem:[#allocation17_spill]]  ;;  %s1875_s18 = smov %s1513_s19 }
 0x744   : > { %s1873_s26 = sld [smem:[#allocation16_spill]] }
 0x745   : > { %s1874_s20 = sld [smem:[#allocation18_spill]] }
 0x749   : > { %p22_p8 = scmp.ge.s32.totalorder %s1872_s21, 4  }
 0x74a   : > { %s1876_s19 = smov %s1873_s26 }
 0x74b   :  { %24 = sbr.rel (!%p22_p8) target bundleno = 11 (0xb), region = 124 }
 0x750   :  { %1015 = vsyncpa [#allocation3], 1 }
 0x751   :  { %1017 = vsyncpa [#allocation3 + $0x1], 1 }
 0x752   :  { %1018 = vsyncpa [#allocation6], 1 }
 0x753   :  { %1020 = vsyncpa [#allocation6 + $0x1], 1 }
 0x754   :  { %1021 = vsyncpa [#allocation9], 1 }
 0x755   :  { %1022 = vsyncpa [#allocation4], 1 }
 0x756   :  { %1024 = vsyncpa [#allocation4 + $0x1], 1 }

</bundles_post_ra>
